<compile_context>
chip_gen: v7x
topology: tpu7x:2x2x1
jax: 0.10.0
libtpu: 0.0.40
codegen_flags: <defaults>
</compile_context>

<pallas_src>
import numpy as np

import jax
import jax.numpy as jnp
from jax.experimental import pallas as pl
from jax.experimental.pallas import tpu as pltpu


def _round_up(x, m):
    return ((x + m - 1) // m) * m


def _elu(x):
    # ELU(alpha=1): x if x > 0 else exp(x) - 1 (clamped so the untaken branch
    # cannot overflow).
    # TODO(synk): PyTorch uses expm1; exp(x)-1 loses a few bits very close to
    # 0- (expm1 lowering is not guaranteed in Mosaic; difference is benign).
    return jnp.where(x > 0, x, jnp.exp(jnp.minimum(x, 0.0)) - 1.0)


# ---------------------------------------------------------------------------
# Capability probe: can weight BlockSpecs be single-buffered?
# ---------------------------------------------------------------------------
def _probe_single_buffer_weights():
    if not hasattr(pl, "Buffered"):
        return False

    def _copy_kernel(x_ref, o_ref):
        o_ref[...] = x_ref[...]

    try:
        x = jnp.zeros((8, 128), jnp.float32)
        out = pl.pallas_call(
            _copy_kernel,
            out_shape=jax.ShapeDtypeStruct((8, 128), jnp.float32),
            grid=(2,),
            in_specs=[pl.BlockSpec((8, 128), lambda i: (0, 0),
                                   memory_space=pltpu.VMEM,
                                   pipeline_mode=pl.Buffered(1))],
            out_specs=pl.BlockSpec((8, 128), lambda i: (0, 0),
                                   memory_space=pltpu.VMEM),
        )(x)
        jax.block_until_ready(out)
        return True
    except Exception:
        return False


_SINGLE_BUFFER_WEIGHTS = _probe_single_buffer_weights()


def _default_compute_dtype():
    """bf16 on v6e/v7x (full-rate bf16 MXU), f32 on older generations."""
    try:
        kind = jax.devices()[0].device_kind.lower()
    except Exception:
        return jnp.float32
    if any(tag in kind for tag in ("v6", "v7", "7x")):
        return jnp.bfloat16
    return jnp.float32


# ---------------------------------------------------------------------------
# Kernels
# ---------------------------------------------------------------------------
def _fused_mlp_kernel(x_ref, w1_ref, b1_ref, w2_ref, b2_ref, w3_ref, b3_ref,
                      o_ref):
    """3-layer MLP; for the double net both heads are fused via concat /
    block-diagonal weights (used when 2H fits in one MXU tile)."""
    x = x_ref[...].astype(w1_ref.dtype)                                   # [bb, I]
    h = _elu(jnp.dot(x, w1_ref[...],
                     preferred_element_type=jnp.float32) + b1_ref[...])   # [bb, K1]
    h = _elu(jnp.dot(h.astype(w2_ref.dtype), w2_ref[...],
                     preferred_element_type=jnp.float32) + b2_ref[...])   # [bb, K2]
    h = jnp.dot(h.astype(w3_ref.dtype), w3_ref[...],
                preferred_element_type=jnp.float32) + b3_ref[...]         # [bb, O]
    o_ref[...] = h.astype(o_ref.dtype)


def _two_head_mlp_kernel(x_ref, w1_ref, b1_ref,
                         w2a_ref, b2a_ref, w3a_ref, b3a_ref,
                         w2b_ref, b2b_ref, w3b_ref, b3b_ref, o_ref):
    """Double-head MLP with per-head layer-2/3 dots (used when 2H is larger
    than one MXU tile so the block-diagonal zeros would cost real MXU work).
    Layer 1 stays concatenated (shared input, dense weights)."""
    x = x_ref[...].astype(w1_ref.dtype)                                   # [bb, I]
    h = _elu(jnp.dot(x, w1_ref[...],
                     preferred_element_type=jnp.float32) + b1_ref[...])   # [bb, 2H]
    half = h.shape[1] // 2
    apad = o_ref.shape[1] // 2

    ha = _elu(jnp.dot(h[:, :half].astype(w2a_ref.dtype), w2a_ref[...],
                      preferred_element_type=jnp.float32) + b2a_ref[...])
    hb = _elu(jnp.dot(h[:, half:].astype(w2b_ref.dtype), w2b_ref[...],
                      preferred_element_type=jnp.float32) + b2b_ref[...])

    oa = jnp.dot(ha.astype(w3a_ref.dtype), w3a_ref[...],
                 preferred_element_type=jnp.float32) + b3a_ref[...]       # [bb, Apad]
    ob = jnp.dot(hb.astype(w3b_ref.dtype), w3b_ref[...],
                 preferred_element_type=jnp.float32) + b3b_ref[...]       # [bb, Apad]

    o_ref[:, :apad] = oa.astype(o_ref.dtype)
    o_ref[:, apad:] = ob.astype(o_ref.dtype)


# ---------------------------------------------------------------------------
# pallas_call wrapper
# ---------------------------------------------------------------------------
def _run_mlp(kernel, state, wb, out_width, out_dtype, *, block_b, elu_cols):
    """Run a 3-layer MLP kernel over a batch grid with VMEM-resident weights."""
    B, I = state.shape
    in_itemsize = np.dtype(state.dtype).itemsize
    out_itemsize = np.dtype(out_dtype).itemsize

    # Batch tile: sublane-friendly (16 rows for a bf16 output slab, else 8).
    sub = 16 if np.dtype(out_dtype) == np.dtype(jnp.bfloat16) else 8
    bb = max(sub, min(_round_up(block_b, sub), _round_up(B, sub)))
    grid = (pl.cdiv(B, bb),)          # partial last block handled by Pallas

    single_buf = _SINGLE_BUFFER_WEIGHTS

    def const_spec(a):
        # Full-array block, same block every grid step -> DMA'd once, stays
        # VMEM-resident. Single-buffered when supported (constant index_map
        # gains nothing from double buffering).
        kwargs = dict(memory_space=pltpu.VMEM)
        if single_buf:
            kwargs["pipeline_mode"] = pl.Buffered(1)
        return pl.BlockSpec(a.shape, lambda i: (0,) * a.ndim, **kwargs)

    wb_bytes = sum(int(a.size) * np.dtype(a.dtype).itemsize for a in wb)
    flops = 2 * B * sum(a.shape[0] * a.shape[1] for a in wb if a.shape[0] > 1)
    bytes_accessed = (B * I * in_itemsize + wb_bytes + B * out_width * out_itemsize)

    # Explicit VMEM budget: resident weights (+x2 if double buffered) plus the
    # double-buffered state/output tiles, with margin; clamp to 64 MiB so a
    # v6e-tuned config never asks for more than v7x's per-TC physical VMEM.
    need = (wb_bytes * (1 if single_buf else 2)
            + 2 * bb * I * in_itemsize
            + 2 * bb * out_width * out_itemsize)
    vmem_limit = int(min(max(need + (4 << 20), 32 << 20), 64 << 20))

    return pl.pallas_call(
        kernel,
        out_shape=jax.ShapeDtypeStruct((B, out_width), out_dtype),
        grid=grid,
        in_specs=[pl.BlockSpec((bb, I), lambda i: (i, 0),
                               memory_space=pltpu.VMEM)]
                 + [const_spec(a) for a in wb],
        out_specs=pl.BlockSpec((bb, out_width), lambda i: (i, 0),
                               memory_space=pltpu.VMEM),
        compiler_params=pltpu.CompilerParams(
            dimension_semantics=("parallel",),        # megacore on v7x
            vmem_limit_bytes=vmem_limit),
        cost_estimate=pl.CostEstimate(
            flops=int(flops),
            transcendentals=int(B * elu_cols),
            bytes_accessed=int(bytes_accessed)),
    )(state, *wb)


# ---------------------------------------------------------------------------
# Weight preparation (fusion / padding)
# ---------------------------------------------------------------------------
def _prep_double_blockdiag(params, compute_dtype):
    """Concat layer 1, block-diag layers 2/3: one matmul per layer covers both
    heads. Free only while 2H fits one MXU tile (gated by caller)."""
    I, H = params["w1"].shape
    A = params["w3"].shape[1]
    out_w = _round_up(2 * A, 128)                    # lane-dense output slab
    cast = lambda w: w.astype(compute_dtype)

    w1f = cast(jnp.concatenate([params["w1"], params["w4"]], axis=1))      # [I, 2H]
    b1f = jnp.concatenate([params["b1"], params["b4"]], axis=1)            # [1, 2H]

    w2f = jnp.zeros((2 * H, 2 * H), params["w2"].dtype)
    w2f = cast(w2f.at[:H, :H].set(params["w2"]).at[H:, H:].set(params["w5"]))
    b2f = jnp.concatenate([params["b2"], params["b5"]], axis=1)            # [1, 2H]

    w3f = jnp.zeros((2 * H, out_w), params["w3"].dtype)
    w3f = cast(w3f.at[:H, :A].set(params["w3"]).at[H:, A:2 * A].set(params["w6"]))
    b3f = jnp.zeros((1, out_w), params["b3"].dtype)
    b3f = b3f.at[:, :A].set(params["b3"]).at[:, A:2 * A].set(params["b6"])

    wb = (w1f, b1f, w2f, b2f, w3f, b3f)
    return wb, out_w, 4 * H


def _prep_double_perhead(params, compute_dtype):
    """Shared concatenated layer 1, per-head layers 2/3 (large H)."""
    I, H = params["w1"].shape
    A = params["w3"].shape[1]
    a_pad = _round_up(A, 128)
    cast = lambda w: w.astype(compute_dtype)

    def pad_out(w, b):
        wp = jnp.zeros((H, a_pad), w.dtype).at[:, :A].set(w)
        bp = jnp.zeros((1, a_pad), b.dtype).at[:, :A].set(b)
        return cast(wp), bp

    w3a, b3a = pad_out(params["w3"], params["b3"])
    w3b, b3b = pad_out(params["w6"], params["b6"])
    w1f = cast(jnp.concatenate([params["w1"], params["w4"]], axis=1))      # [I, 2H]
    b1f = jnp.concatenate([params["b1"], params["b4"]], axis=1)

    wb = (w1f, b1f,
          cast(params["w2"]), params["b2"], w3a, b3a,
          cast(params["w5"]), params["b5"], w3b, b3b)
    return wb, 2 * a_pad, 4 * H


def _prep_single(params, compute_dtype):
    H = params["w1"].shape[1]
    A = params["w3"].shape[1]
    out_w = _round_up(A, 128)
    cast = lambda w: w.astype(compute_dtype)
    w3f = jnp.zeros((H, out_w), params["w3"].dtype).at[:, :A].set(params["w3"])
    b3f = jnp.zeros((1, out_w), params["b3"].dtype).at[:, :A].set(params["b3"])
    wb = (cast(params["w1"]), params["b1"], cast(params["w2"]), params["b2"],
          cast(w3f), b3f)
    return wb, out_w, 2 * H


# ---------------------------------------------------------------------------
# Forward (matches QNetwork_discrete.forward) — one pallas_call total
# ---------------------------------------------------------------------------
def qnetwork_discrete_forward(params, state, double, compute_dtype=None,
                              block_b=1024, max_fused_width=256):
    if compute_dtype is None:
        compute_dtype = _default_compute_dtype()
    is_bf16 = np.dtype(compute_dtype) == np.dtype(jnp.bfloat16)
    out_dtype = jnp.bfloat16 if is_bf16 else jnp.float32

    A = params["w3"].shape[1]
    H = params["w1"].shape[1]

    if double:
        if 2 * H <= max_fused_width:
            wb, out_w, elu_cols = _prep_double_blockdiag(params, compute_dtype)
            out = _run_mlp(_fused_mlp_kernel, state, wb, out_w, out_dtype,
                           block_b=block_b, elu_cols=elu_cols)
            q1, q2 = out[:, :A], out[:, A:2 * A]
        else:
            wb, out_w, elu_cols = _prep_double_perhead(params, compute_dtype)
            out = _run_mlp(_two_head_mlp_kernel, state, wb, out_w, out_dtype,
                           block_b=block_b, elu_cols=elu_cols)
            a_pad = out_w // 2
            q1, q2 = out[:, :A], out[:, a_pad:a_pad + A]
        return q1.astype(jnp.float32), q2.astype(jnp.float32)

    wb, out_w, elu_cols = _prep_single(params, compute_dtype)
    out = _run_mlp(_fused_mlp_kernel, state, wb, out_w, out_dtype,
                   block_b=block_b, elu_cols=elu_cols)
    return out[:, :A].astype(jnp.float32)


# ---------------------------------------------------------------------------
# Init (matches weights_init_: xavier_uniform_ weights, zero bias)
# ---------------------------------------------------------------------------
def xavier_uniform(key, fan_in, fan_out, gain=1.0, dtype=jnp.float32):
    bound = gain * jnp.sqrt(6.0 / (fan_in + fan_out))
    return jax.random.uniform(key, (fan_in, fan_out), dtype, -bound, bound)


def init_qnetwork_discrete(key, num_inputs, num_actions, hidden_dim, double):
    ks = jax.random.split(key, 6)
    params = {
        "w1": xavier_uniform(ks[0], num_inputs, hidden_dim),
        "b1": jnp.zeros((1, hidden_dim), jnp.float32),
        "w2": xavier_uniform(ks[1], hidden_dim, hidden_dim),
        "b2": jnp.zeros((1, hidden_dim), jnp.float32),
        "w3": xavier_uniform(ks[2], hidden_dim, num_actions),
        "b3": jnp.zeros((1, num_actions), jnp.float32),
    }
    if double:
        params.update({
            "w4": xavier_uniform(ks[3], num_inputs, hidden_dim),
            "b4": jnp.zeros((1, hidden_dim), jnp.float32),
            "w5": xavier_uniform(ks[4], hidden_dim, hidden_dim),
            "b5": jnp.zeros((1, hidden_dim), jnp.float32),
            "w6": xavier_uniform(ks[5], hidden_dim, num_actions),
            "b6": jnp.zeros((1, num_actions), jnp.float32),
        })
    return params


# ---------------------------------------------------------------------------
# Pure-JAX reference for correctness checking
# ---------------------------------------------------------------------------
def _reference_forward(params, state, double):
    def head(w1, b1, w2, b2, w3, b3):
        h = _elu(state @ w1 + b1)
        h = _elu(h @ w2 + b2)
        return h @ w3 + b3

    x1 = head(params["w1"], params["b1"], params["w2"], params["b2"],
              params["w3"], params["b3"])
    if double:
        x2 = head(params["w4"], params["b4"], params["w5"], params["b5"],
                  params["w6"], params["b6"])
        return x1, x2
    return x1


if __name__ == "__main__":
    key = jax.random.PRNGKey(0)
    k_param, k_param_big, k_state = jax.random.split(key, 3)

    batch = 2
    num_inputs = 16
    num_actions = 8
    hidden_dim = 32

    params = init_qnetwork_discrete(k_param, num_inputs, num_actions,
                                    hidden_dim, True)
    state = jax.random.normal(k_state, (batch, num_inputs), jnp.float32)

    fwd = jax.jit(qnetwork_discrete_forward,
                  static_argnames=("double", "compute_dtype", "block_b",
                                   "max_fused_width"))

    # --- 1) double head, f32, small H (fused block-diag path): exact ---
    q1, q2 = fwd(params, state, double=True, compute_dtype=jnp.float32)
    jax.block_until_ready((q1, q2))
    r1, r2 = _reference_forward(params, state, True)
    assert q1.shape == (batch, num_actions) and q2.shape == (batch, num_actions)
    assert jnp.allclose(q1, r1, atol=1e-5) and jnp.allclose(q2, r2, atol=1e-5)

    # --- 2) single head, f32: exact ---
    q_single = fwd(params, state, double=False, compute_dtype=jnp.float32)
    jax.block_until_ready(q_single)
    r_single = _reference_forward(params, state, False)
    assert q_single.shape == (batch, num_actions)
    assert jnp.allclose(q_single, r_single, atol=1e-5)

    # --- 3) ragged batch, multi-step grid, no external pad: exact ---
    state_big = jax.random.normal(k_state, (20, num_inputs), jnp.float32)
    qb1, qb2 = fwd(params, state_big, double=True,
                   compute_dtype=jnp.float32, block_b=8)
    jax.block_until_ready((qb1, qb2))
    rb1, rb2 = _reference_forward(params, state_big, True)
    assert jnp.allclose(qb1, rb1, atol=1e-5) and jnp.allclose(qb2, rb2, atol=1e-5)

    # --- 4) large hidden dim -> per-head dot path (2H > 256): exact-ish ---
    params_big = init_qnetwork_discrete(k_param_big, num_inputs, num_actions,
                                        192, True)
    qh1, qh2 = fwd(params_big, state, double=True, compute_dtype=jnp.float32)
    jax.block_until_ready((qh1, qh2))
    rh1, rh2 = _reference_forward(params_big, state, True)
    assert jnp.allclose(qh1, rh1, atol=1e-4) and jnp.allclose(qh2, rh2, atol=1e-4)

    # --- 5) default compute dtype (bf16 on v6e/v7x, f32 elsewhere): loose ---
    qd1, qd2 = fwd(params, state, double=True)
    jax.block_until_ready((qd1, qd2))
    assert jnp.allclose(qd1, r1, atol=2e-1, rtol=1e-1)
    assert jnp.allclose(qd2, r2, atol=2e-1, rtol=1e-1)

    # --- 6) explicit bf16 weights/activations + bf16 output slab: loose ---
    qbf1, qbf2 = fwd(params, state, double=True, compute_dtype=jnp.bfloat16)
    jax.block_until_ready((qbf1, qbf2))
    assert jnp.allclose(qbf1, r1, atol=2e-1, rtol=1e-1)
    assert jnp.allclose(qbf2, r2, atol=2e-1, rtol=1e-1)

    print("KERNEL_OK")
</pallas_src>

<mosaic_0001>
module attributes {stable_mosaic.version = 11 : i64} {
  func.func @_copy_kernel(%arg0: i32, %arg1: memref<8x128xf32, #tpu.memory_space<vmem>>, %arg2: memref<8x128xf32, #tpu.memory_space<vmem>>) attributes {dimension_semantics = [#tpu.dimension_semantics<arbitrary>], iteration_bounds = array<i64: 2>, scalar_prefetch = 0 : i64, scratch_operands = 0 : i64, tpu.core_type = #tpu.core_type<tc>, window_params = [{pipeline_mode = #tpu.pipeline_mode<synchronous>, transform_indices = @transform_0, window_bounds = array<i64: 8, 128>}, {pipeline_mode = #tpu.pipeline_mode<synchronous>, transform_indices = @transform_1, window_bounds = array<i64: 8, 128>}]} {
    %c0 = arith.constant 0 : index
    %c0_0 = arith.constant 0 : index
    %0 = vector.load %arg1[%c0, %c0_0] : memref<8x128xf32, #tpu.memory_space<vmem>>, vector<8x128xf32>
    %c0_1 = arith.constant 0 : index
    %c0_2 = arith.constant 0 : index
    %1 = vector.load %arg2[%c0_1, %c0_2] : memref<8x128xf32, #tpu.memory_space<vmem>>, vector<8x128xf32>
    tpu.vector_store %arg2[%c0_1, %c0_2], %0 {strides = array<i32>} : memref<8x128xf32, #tpu.memory_space<vmem>>, vector<8x128xf32>,
    return
  }
  func.func @transform_0(%arg0: i32) -> (i32, i32) {
    %c0_i32 = arith.constant 0 : i32
    %c0_i32_0 = arith.constant 0 : i32
    %c0_i32_1 = arith.constant 0 : i32
    return %c0_i32, %c0_i32_0 : i32, i32
  }
  func.func @transform_1(%arg0: i32) -> (i32, i32) {
    %c0_i32 = arith.constant 0 : i32
    %c0_i32_0 = arith.constant 0 : i32
    %c0_i32_1 = arith.constant 0 : i32
    return %c0_i32, %c0_i32_0 : i32, i32
  }
}

module attributes {stable_mosaic.version = 11 : i64} {
  func.func @_fused_mlp_kernel(%arg0: i32, %arg1: memref<8x16xf32, #tpu.memory_space<vmem>>, %arg2: memref<16x64xf32, #tpu.memory_space<vmem>>, %arg3: memref<1x64xf32, #tpu.memory_space<vmem>>, %arg4: memref<64x64xf32, #tpu.memory_space<vmem>>, %arg5: memref<1x64xf32, #tpu.memory_space<vmem>>, %arg6: memref<64x128xf32, #tpu.memory_space<vmem>>, %arg7: memref<1x128xf32, #tpu.memory_space<vmem>>, %arg8: memref<8x128xf32, #tpu.memory_space<vmem>>) attributes {dimension_semantics = [#tpu.dimension_semantics<parallel>], iteration_bounds = array<i64: 1>, scalar_prefetch = 0 : i64, scratch_operands = 0 : i64, tpu.core_type = #tpu.core_type<tc>, window_params = [{transform_indices = @transform_0, window_bounds = array<i64: 8, 16>}, {pipeline_mode = #tpu.pipeline_mode<synchronous>, transform_indices = @transform_1, window_bounds = array<i64: 16, 64>}, {pipeline_mode = #tpu.pipeline_mode<synchronous>, transform_indices = @transform_2, window_bounds = array<i64: 1, 64>}, {pipeline_mode = #tpu.pipeline_mode<synchronous>, transform_indices = @transform_3, window_bounds = array<i64: 64, 64>}, {pipeline_mode = #tpu.pipeline_mode<synchronous>, transform_indices = @transform_4, window_bounds = array<i64: 1, 64>}, {pipeline_mode = #tpu.pipeline_mode<synchronous>, transform_indices = @transform_5, window_bounds = array<i64: 64, 128>}, {pipeline_mode = #tpu.pipeline_mode<synchronous>, transform_indices = @transform_6, window_bounds = array<i64: 1, 128>}, {transform_indices = @transform_7, window_bounds = array<i64: 8, 128>}]} {
    %c0 = arith.constant 0 : index
    %c0_0 = arith.constant 0 : index
    %0 = vector.load %arg1[%c0, %c0_0] : memref<8x16xf32, #tpu.memory_space<vmem>>, vector<8x16xf32>
    %c0_1 = arith.constant 0 : index
    %c0_2 = arith.constant 0 : index
    %1 = vector.load %arg2[%c0_1, %c0_2] : memref<16x64xf32, #tpu.memory_space<vmem>>, vector<16x64xf32>
    %cst = arith.constant dense<0.000000e+00> : vector<8x64xf32>
    %2 = tpu.matmul %0, %1, %cst {dimension_numbers = #tpu.dot_dimension_numbers<[1], [0], [0], [1], [0, 0, 1, 1], [], []>} : vector<8x16xf32>, vector<16x64xf32>, vector<8x64xf32> -> vector<8x64xf32>
    %c0_3 = arith.constant 0 : index
    %c0_4 = arith.constant 0 : index
    %3 = vector.load %arg3[%c0_3, %c0_4] : memref<1x64xf32, #tpu.memory_space<vmem>>, vector<1x64xf32>
    %4 = vector.broadcast %3 : vector<1x64xf32> to vector<8x64xf32>
    %5 = arith.addf %2, %4 : vector<8x64xf32>
    %cst_5 = arith.constant 0.000000e+00 : f32
    %6 = vector.broadcast %cst_5 : f32 to vector<8x64xf32>
    %7 = arith.cmpf ogt, %5, %6 : vector<8x64xf32>
    %cst_6 = arith.constant 0.000000e+00 : f32
    %8 = vector.broadcast %cst_6 : f32 to vector<8x64xf32>
    %9 = arith.minimumf %5, %8 : vector<8x64xf32>
    %10 = math.exp %9 : vector<8x64xf32>
    %cst_7 = arith.constant 1.000000e+00 : f32
    %11 = vector.broadcast %cst_7 : f32 to vector<8x64xf32>
    %12 = arith.subf %10, %11 : vector<8x64xf32>
    %13 = arith.select %7, %5, %12 : vector<8x64xi1>, vector<8x64xf32>
    %c0_8 = arith.constant 0 : index
    %c0_9 = arith.constant 0 : index
    %14 = vector.load %arg4[%c0_8, %c0_9] : memref<64x64xf32, #tpu.memory_space<vmem>>, vector<64x64xf32>
    %cst_10 = arith.constant dense<0.000000e+00> : vector<8x64xf32>
    %15 = tpu.matmul %13, %14, %cst_10 {dimension_numbers = #tpu.dot_dimension_numbers<[1], [0], [0], [1], [0, 0, 1, 1], [], []>} : vector<8x64xf32>, vector<64x64xf32>, vector<8x64xf32> -> vector<8x64xf32>
    %c0_11 = arith.constant 0 : index
    %c0_12 = arith.constant 0 : index
    %16 = vector.load %arg5[%c0_11, %c0_12] : memref<1x64xf32, #tpu.memory_space<vmem>>, vector<1x64xf32>
    %17 = vector.broadcast %16 : vector<1x64xf32> to vector<8x64xf32>
    %18 = arith.addf %15, %17 : vector<8x64xf32>
    %cst_13 = arith.constant 0.000000e+00 : f32
    %19 = vector.broadcast %cst_13 : f32 to vector<8x64xf32>
    %20 = arith.cmpf ogt, %18, %19 : vector<8x64xf32>
    %cst_14 = arith.constant 0.000000e+00 : f32
    %21 = vector.broadcast %cst_14 : f32 to vector<8x64xf32>
    %22 = arith.minimumf %18, %21 : vector<8x64xf32>
    %23 = math.exp %22 : vector<8x64xf32>
    %cst_15 = arith.constant 1.000000e+00 : f32
    %24 = vector.broadcast %cst_15 : f32 to vector<8x64xf32>
    %25 = arith.subf %23, %24 : vector<8x64xf32>
    %26 = arith.select %20, %18, %25 : vector<8x64xi1>, vector<8x64xf32>
    %c0_16 = arith.constant 0 : index
    %c0_17 = arith.constant 0 : index
    %27 = vector.load %arg6[%c0_16, %c0_17] : memref<64x128xf32, #tpu.memory_space<vmem>>, vector<64x128xf32>
    %cst_18 = arith.constant dense<0.000000e+00> : vector<8x128xf32>
    %28 = tpu.matmul %26, %27, %cst_18 {dimension_numbers = #tpu.dot_dimension_numbers<[1], [0], [0], [1], [0, 0, 1, 1], [], []>} : vector<8x64xf32>, vector<64x128xf32>, vector<8x128xf32> -> vector<8x128xf32>
    %c0_19 = arith.constant 0 : index
    %c0_20 = arith.constant 0 : index
    %29 = vector.load %arg7[%c0_19, %c0_20] : memref<1x128xf32, #tpu.memory_space<vmem>>, vector<1x128xf32>
    %30 = vector.broadcast %29 : vector<1x128xf32> to vector<8x128xf32>
    %31 = arith.addf %28, %30 : vector<8x128xf32>
    %c0_21 = arith.constant 0 : index
    %c0_22 = arith.constant 0 : index
    %32 = vector.load %arg8[%c0_21, %c0_22] : memref<8x128xf32, #tpu.memory_space<vmem>>, vector<8x128xf32>
    tpu.vector_store %arg8[%c0_21, %c0_22], %31 {strides = array<i32>} : memref<8x128xf32, #tpu.memory_space<vmem>>, vector<8x128xf32>,
    return
  }
  func.func @transform_0(%arg0: i32) -> (i32, i32) {
    %c0_i32 = arith.constant 0 : i32
    %c0_i32_0 = arith.constant 0 : i32
    return %arg0, %c0_i32 : i32, i32
  }
  func.func @transform_1(%arg0: i32) -> (i32, i32) {
    %c0_i32 = arith.constant 0 : i32
    %c0_i32_0 = arith.constant 0 : i32
    %c0_i32_1 = arith.constant 0 : i32
    return %c0_i32, %c0_i32_0 : i32, i32
  }
  func.func @transform_2(%arg0: i32) -> (i32, i32) {
    %c0_i32 = arith.constant 0 : i32
    %c0_i32_0 = arith.constant 0 : i32
    %c0_i32_1 = arith.constant 0 : i32
    return %c0_i32, %c0_i32_0 : i32, i32
  }
  func.func @transform_3(%arg0: i32) -> (i32, i32) {
    %c0_i32 = arith.constant 0 : i32
    %c0_i32_0 = arith.constant 0 : i32
    %c0_i32_1 = arith.constant 0 : i32
    return %c0_i32, %c0_i32_0 : i32, i32
  }
  func.func @transform_4(%arg0: i32) -> (i32, i32) {
    %c0_i32 = arith.constant 0 : i32
    %c0_i32_0 = arith.constant 0 : i32
    %c0_i32_1 = arith.constant 0 : i32
    return %c0_i32, %c0_i32_0 : i32, i32
  }
  func.func @transform_5(%arg0: i32) -> (i32, i32) {
    %c0_i32 = arith.constant 0 : i32
    %c0_i32_0 = arith.constant 0 : i32
    %c0_i32_1 = arith.constant 0 : i32
    return %c0_i32, %c0_i32_0 : i32, i32
  }
  func.func @transform_6(%arg0: i32) -> (i32, i32) {
    %c0_i32 = arith.constant 0 : i32
    %c0_i32_0 = arith.constant 0 : i32
    %c0_i32_1 = arith.constant 0 : i32
    return %c0_i32, %c0_i32_0 : i32, i32
  }
  func.func @transform_7(%arg0: i32) -> (i32, i32) {
    %c0_i32 = arith.constant 0 : i32
    %c0_i32_0 = arith.constant 0 : i32
    return %arg0, %c0_i32 : i32, i32
  }
}

</mosaic_0001>

<bundles_post_ra>
// kernel: tpu_custom_call.1
= control target key start
LH: loop header
LB: loop body
LE: loop exit
PB: predicated region body
PF: predicated region fallthrough
CT: control target
= control target key end

     0   :  { %6 = vsyncpa [#allocation3], 0  ;;  %s340_s0 = inlined_call_operand.hbm [shape: f32[8,128], index: 0, kind: input, shape index: {}]   ;;  %s341_s1 = inlined_call_operand.hbm [shape: f32[8,128], index: 1, kind: output, shape index: {}]  }
   0x1   :  { %7 = vsyncpa [#allocation4], 0  ;;  %s261_s6 = smov 0  }
   0x2 LB: > { %s144_s7 = sadd.s32 4294967295, %s247_s6   ;;  %p145_p0 = scmp.ge.s32.totalorder %s247_s6, 1  ;;  %s247_s6 = sphi %s261_s6, %s13_s6  }
   0x3   : > { %p60_p1 = scmp.lt.s32.totalorder %s247_s6, 3  ;;  %p275_p3 = scmp.eq.s32.totalorder %s144_s7, 0 }
   0x4   : > { %s249_s10 = smov [#allocation2]   ;;  %s179_s15 = scalar_lea.hbm %s340_s0, 128 }
   0x5   : > { %p269_p2 = pnand %p145_p0, %p60_p1  ;;  %s73_s11 = sshll.u32 %s249_s10, 4  ;;  %s74_s11 = int_to_ptr.vmem [resolvable:$true] %s73_s11 }
   0x6   : > { %s346_s9 = scalar_select %p275_p3, 1, 0 }
   0x7   : > { %s345_s8 = scalar_select %p269_p2, 1, 0 }
   0x8   : > { %p161_p4 = pneg %p269_p2  ;;  %p180_p6 = scmp.ne.s32.totalorder %s340_s0, %s179_s15 }
   0x9   : > { %p186_p10 = scmp.lt.u32.totalorder %s179_s15, %s340_s0 }
   0xa   : > { %p283_p5 = pnand %p275_p3, %p161_p4 }
   0xc   : > { %p181_p7 = pneg %p283_p5 }
   0xe   : > { %p182_p8 = pnand %p181_p7, %p180_p6 }
  0x10   : > { %p183_p9 = pneg %p182_p8 }
  0x12   : > { %p188_p11 = pnand %p186_p10, %p183_p9 }
  0x14   : > { %191 = shalt.err (!%p188_p11)
}
  0x15   : > { %s192_s20 = scalar_lea.vmem %s74_s11, 128  ;;  %p200_p1 = scmp.lt.s32.totalorder %s74_s11, %s74_s11 }
  0x16   : > { %p193_p12 = scmp.ne.s32.totalorder %s74_s11, %s192_s20  ;;  %p201_p4 = scmp.lt.s32.totalorder %s192_s20, %s192_s20 }
  0x18   : > { %p195_p13 = pnand %p193_p12, %p181_p7  ;;  %p202_p3 = por %p201_p4, %p200_p1 }
  0x1a   : > { %p196_p0 = pneg %p195_p13 }
  0x1c   : > { %p203_p2 = pnand %p202_p3, %p196_p0 }
  0x1e   : > { %206 = shalt.err (!%p203_p2)
}
  0x1f   : > { %164 = dma.hbm_to_vmem [thread:$0]  (!%p283_p5), %s340_s0, 128, %s74_s11, [#allocation3]  }
  0x20   : > { %p348_p6 = scmp.ne.s32.totalorder %s345_s8, 0 }
  0x21   : > { %p349_p8 = scmp.ne.s32.totalorder (!%p348_p6), %s346_s9, 0 }
  0x22   : > { %86 = sbr.rel (%p348_p6) target bundleno = 67 (0x43), region = 24 }
  0x29   : > { %238 = dma.done.wait (%p349_p8), [#allocation3], 128  }
  0x2a   : > { %240 = vsyncadd (%p349_p8), [#allocation3], 4294967168  ;;  %s250_s23 = smov [#allocation5]   ;;  %p311_p2 = scmp.eq.s32.totalorder %s144_s7, 1  ;;  %v96_v0 = vld [vmem:[#allocation2] sm:$0xff] }
  0x2b   : > { %s105_s24 = sshll.u32 %s250_s23, 4  ;;  %97 = vst [vmem:[#allocation5] sm:$0xff] %v96_v0  ;;  %s106_s24 = int_to_ptr.vmem [resolvable:$true] %s105_s24 }
  0x2c   : > { %s207_s26 = scalar_lea.vmem %s106_s24, 128  ;;  %p214_p9 = scmp.lt.s32.totalorder %s106_s24, %s106_s24 }
  0x2d   : > { %p208_p3 = scmp.ne.s32.totalorder %s106_s24, %s207_s26  ;;  %p215_p10 = scmp.lt.s32.totalorder %s207_s26, %s207_s26 }
  0x2f   : > { %p209_p5 = pnand %p208_p3, %p311_p2  ;;  %p216_p11 = por %p215_p10, %p214_p9 }
  0x31   : > { %p210_p7 = pneg %p209_p5 }
  0x33   : > { %p217_p12 = pnand %p216_p11, %p210_p7 }
  0x35   : > { %220 = shalt.err (!%p217_p12)
}
  0x36   : > { %s221_s29 = scalar_lea.hbm %s341_s1, 128 }
  0x37   : > { %p222_p13 = scmp.ne.s32.totalorder %s341_s1, %s221_s29  ;;  %p227_p4 = scmp.lt.u32.totalorder %s221_s29, %s341_s1 }
  0x39   : > { %p223_p0 = pnand %p222_p13, %p311_p2 }
  0x3b   : > { %p224_p1 = pneg %p223_p0 }
  0x3d   : > { %p229_p6 = pnand %p227_p4, %p224_p1 }
  0x3f   : > { %232 = shalt.err (!%p229_p6)
}
  0x40   : > { %158 = dma.vmem_to_hbm [thread:$0]  (%p311_p2), %s106_s24, 128, %s341_s1, [#allocation4]  }
  0x41   : > { %242 = dma.done.wait (%p311_p2), [#allocation4], 128  }
  0x42   : > { %244 = vsyncadd (%p311_p2), [#allocation4], 4294967168 }
  0x43 PF: > { %s13_s6 = sadd.s32 1, %s247_s6  }
  0x44   : > { %p10_p8 = scmp.ge.s32.totalorder %s13_s6, 4  }
  0x46   :  { %12 = sbr.rel (!%p10_p8) target bundleno = 2 (0x2), region = 53 }
  0x4d   :  { %118 = vsyncpa [#allocation3], 1 }
  0x4e   :  { %120 = vsyncpa [#allocation3 + $0x1], 1 }
  0x4f   :  { %121 = vsyncpa [#allocation4], 1 }
  0x50   :  { %123 = vsyncpa [#allocation4 + $0x1], 1 }

// kernel: qnetwork_discrete_forward.1
= control target key start
LH: loop header
LB: loop body
LE: loop exit
PB: predicated region body
PF: predicated region fallthrough
CT: control target
= control target key end

     0   :  { %v447_v2 = vmov 0.0|0.0   ;;  %vm448_vm0 = vmmov 0   ;;  %v449_v4 = vmov 0.0   ;;  %vm36_vm1 = vcmask 130048   ;;  %s561_s0 = inlined_call_operand.vmem [shape: f32[2,16], index: 0, kind: input, shape index: {}]   ;;  %s562_s1 = inlined_call_operand.vmem [shape: f32[16,64], index: 1, kind: input, shape index: {}]   ;;  %s563_s2 = inlined_call_operand.vmem [shape: f32[1,64], index: 2, kind: input, shape index: {}]   ;;  %s564_s3 = inlined_call_operand.vmem [shape: f32[64,64], index: 3, kind: input, shape index: {}]   ;;  %s565_s4 = inlined_call_operand.vmem [shape: f32[1,64], index: 4, kind: input, shape index: {}]   ;;  %s566_s5 = inlined_call_operand.vmem [shape: f32[64,128], index: 5, kind: input, shape index: {}]   ;;  %s567_s6 = inlined_call_operand.vmem [shape: f32[1,128], index: 6, kind: input, shape index: {}]   ;;  %s568_s7 = inlined_call_operand.vmem [shape: f32[2,128], index: 7, kind: output, shape index: {}]  }
   0x1   :  { %v27_v0 = vld [vmem:[%s562_s1] sm:$0xff]  ;;  %v28_v1 = vld [vmem:[%s562_s1 + $0x8] sm:$0xff]  ;;  %413 = vmatprep.subr.bf16.mxu0 %v447_v2  ;;  %372 = vmatprep.mubr.msk.f32.mxu0 %vm448_vm0, %v449_v4  ;;  %v118_v9 = vld [vmem:[%s564_s3 + $0x10] sm:$0xff]  ;;  %vm131_vm2 = vcmask 523264  }
   0x2   :  { %v414_v3 = vpack.c.bf16 %v28_v1, %v27_v0  ;;  %416 = vmatprep.subr.bf16.mxu1 %v447_v2  ;;  %391 = vmatprep.mubr.msk.f32.mxu1 %vm448_vm0, %v449_v4  ;;  %v26_v5 = vld [vmem:[%s561_s0] sm:$0xff]  ;;  %v117_v7 = vld [vmem:[%s564_s3 + $0x8] sm:$0xff]  ;;  %v119_v10 = vld [vmem:[%s564_s3 + $0x18] sm:$0xff] }
   0x3   :  { %v116_v6 = vld [vmem:[%s564_s3] sm:$0xff]  ;;  %v420_v12 = vpack.c.bf16 %v119_v10, %v118_v9  ;;  %v121_v13 = vld [vmem:[%s564_s3 + $0x28] sm:$0xff]  ;;  %v122_v15 = vld [vmem:[%s564_s3 + $0x30] sm:$0xff] }
   0x4   :  { %415 = vmatpush3.bf16.msra.mxu0 %v414_v3  ;;  %v417_v8 = vpack.c.bf16 %v117_v7, %v116_v6  ;;  %v120_v11 = vld [vmem:[%s564_s3 + $0x20] sm:$0xff]  ;;  %v123_v16 = vld [vmem:[%s564_s3 + $0x38] sm:$0xff]  ;;  %v212_v28 = vld [vmem:[%s566_s5 + $0x8] sm:$0xff] }
   0x5   :  { %428 = vmatprep.subr.bf16.mxu0 %v447_v2  ;;  %v423_v14 = vpack.c.bf16 %v121_v13, %v120_v11  ;;  %v426_v17 = vpack.c.bf16 %v123_v16, %v122_v15  ;;  %v339_v18 = vld [vmem:[%s563_s2] ss:$0 sm:$0xff]  ;;  %v213_v30 = vld [vmem:[%s566_s5 + $0x10] sm:$0xff]  ;;  %v214_v31 = vld [vmem:[%s566_s5 + $0x18] sm:$0xff] }
   0x6   :  { %418 = vmatpush3.bf16.msra.mxu1 %v417_v8  ;;  %v211_v27 = vld [vmem:[%s566_s5] sm:$0xff]  ;;  %v432_v32 = vpack.c.bf16 %v214_v31, %v213_v30  ;;  %v216_v34 = vld [vmem:[%s566_s5 + $0x28] sm:$0xff]  ;;  %v217_v36 = vld [vmem:[%s566_s5 + $0x30] sm:$0xff] }
   0x7   :  { %373 = vmatmul.mubr.msk.f32.vlgmr.msra.gmra.mrb[0].mxu0 %vm36_vm1, %v26_v5  ;;  %419 = vmatprep.subr.bf16.mxu1 %v447_v2  ;;  %v429_v29 = vpack.c.bf16 %v212_v28, %v211_v27  ;;  %v215_v33 = vld [vmem:[%s566_s5 + $0x20] sm:$0xff]  ;;  %v218_v37 = vld [vmem:[%s566_s5 + $0x38] sm:$0xff] }
   0x8   :  { %410 = vmatprep.mubr.msk.f32.mxu0 %vm448_vm0, %v449_v4  ;;  %v435_v35 = vpack.c.bf16 %v216_v34, %v215_v33  ;;  %v438_v38 = vpack.c.bf16 %v218_v37, %v217_v36  ;;  %v342_v39 = vld [vmem:[%s565_s4] ss:$0 sm:$0xff] }
   0x9   :  { %430 = vmatpush3.bf16.msra.mxu0 %v429_v29  ;;  %v345_v48 = vld [vmem:[%s567_s6] ss:$0 sm:$0xff] }
   0xa   :  { %421 = vmatpush3.bf16.msra.mxu1 %v420_v12  ;;  %431 = vmatprep.subr.bf16.mxu0 %v447_v2 }
   0xb   :  { %422 = vmatprep.subr.bf16.mxu1 %v447_v2 }
   0xd   :  { %433 = vmatpush3.bf16.msra.mxu0 %v432_v32 }
   0xe   :  { %424 = vmatpush3.bf16.msra.mxu1 %v423_v14  ;;  %434 = vmatprep.subr.bf16.mxu0 %v447_v2 }
   0xf   :  { %425 = vmatprep.subr.bf16.mxu1 %v447_v2 }
  0x11   :  { %436 = vmatpush3.bf16.msra.mxu0 %v435_v35 }
  0x12   :  { %427 = vmatpush3.bf16.msra.mxu1 %v426_v17  ;;  %437 = vmatprep.subr.bf16.mxu0 %v447_v2 }
  0x15   :  { %439 = vmatpush3.bf16.msra.mxu0 %v438_v38 }
  0xda   :  { %v106_v19 = vpop.f32.mrb[0].mxu0 }
  0xdb   :  { %v107_v20 = vadd.f32 %v339_v18, %v106_v19  ;;  %v374_v21 = vpop.f32.mrb[1].mxu0 }
  0xdd   :  { %v111_v22 = vmin.f32 %v107_v20, 0.0  ;;  %vm110_vm3 = vcmp.gt.f32.partialorder %v107_v20, 0.0 }
  0xdf   :  { %v112_v23 = vmul.f32 1.442695, %v111_v22 }
  0xe1   :  { %443 = vpow2.f32 %v112_v23 }
  0xeb   :  { %v444_v24 = vpop.eup %443 }
  0xec   :  { %v341_v25 = vadd.f32 -1.0, %v444_v24 }
  0xee   :  { %v115_v26 = vsel %vm110_vm3, %v107_v20, %v341_v25 }
  0xef   :  { %392 = vmatmul.mubr.msk.f32.vlgmr.msra.gmra.mrb[0].mxu1 %vm131_vm2, %v115_v26 }
 0x1c2   :  { %v201_v40 = vpop.f32.mrb[0].mxu1 }
 0x1c3   :  { %v202_v41 = vadd.f32 %v342_v39, %v201_v40  ;;  %v393_v42 = vpop.f32.mrb[1].mxu1 }
 0x1c5   :  { %v206_v43 = vmin.f32 %v202_v41, 0.0  ;;  %vm205_vm4 = vcmp.gt.f32.partialorder %v202_v41, 0.0 }
 0x1c7   :  { %v207_v44 = vmul.f32 1.442695, %v206_v43 }
 0x1c9   :  { %445 = vpow2.f32 %v207_v44 }
 0x1d3   :  { %v446_v45 = vpop.eup %445 }
 0x1d4   :  { %v344_v46 = vadd.f32 -1.0, %v446_v45 }
 0x1d6   :  { %v210_v47 = vsel %vm205_vm4, %v202_v41, %v344_v46 }
 0x1d7   :  { %411 = vmatmul.mubr.msk.f32.vlgmr.msra.gmra.mrb[2].mxu0 %vm131_vm2, %v210_v47 }
 0x2aa   :  { %v295_v49 = vpop.f32.mrb[2].mxu0 }
 0x2ab   :  { %v296_v50 = vadd.f32 %v345_v48, %v295_v49  ;;  %v412_v51 = vpop.f32.mrb[3].mxu0 }
 0x2ad   :  { %299 = vst [vmem:[#allocation2] sm:$0xff] %v296_v50 }
 0x2b4   :  { %v317_v52 = vld [vmem:[#allocation2] sm:$0x3] }
 0x2b5   :  { %318 = vst [vmem:[%s568_s7] sm:$0x3] %v317_v52 }

</bundles_post_ra>
